<compile_context>
chip_gen: v7x
topology: tpu7x:2x2x1
jax: 0.10.0
libtpu: 0.0.40
codegen_flags: <defaults>
</compile_context>

<pallas_src>
import jax
import jax.numpy as jnp
from jax import lax
from jax.experimental import pallas as pl
from jax.experimental.pallas import tpu as pltpu


F_IN = 10        # real input features
F_OUT = 2        # real output features
F_IN_PAD = 16    # padded input feature rows (2 sublanes worth)
F_OUT_PAD = 8    # padded output feature rows (1 sublane tile)
LANE_CHUNK = 512 # in-kernel lane chunk; keeps intermediates in vregs


def _round_up(n, m):
    return ((n + m - 1) // m) * m


def _soccer_kernel(p_ref, x_ref, o_ref):
    # Parameter slab (constant index_map -> fetched once, VMEM-resident).
    # Layer l lives at p_ref[l]: weight (zero-padded) in rows 0:8, bias column
    # in rows 8:16, lane 0.  All slices start at lane offset 0 (aligned).
    w1 = p_ref[0, 0:8, 0:F_IN_PAD]   # [8, 16]  fc1 weight (padded)
    w2 = p_ref[1, 0:8, 0:8]          # [8, 8]   fc2 weight (padded)
    w3 = p_ref[2, 0:8, 0:8]          # [8, 8]   fc3 weight (padded)
    w4 = p_ref[3, 0:8, 0:8]          # [8, 8]   fc4 weight (padded)
    b1 = p_ref[0, 8:16, 0:1]         # [8, 1] -> broadcast along lanes (cheap)
    b2 = p_ref[1, 8:16, 0:1]
    b3 = p_ref[2, 8:16, 0:1]
    b4 = p_ref[3, 8:16, 0:1]

    n_chunks = x_ref.shape[1] // LANE_CHUNK  # static

    def body(c, carry):
        off = pl.multiple_of(c * LANE_CHUNK, LANE_CHUNK)
        x = x_ref[:, pl.ds(off, LANE_CHUNK)]                 # [16, C] f32
        h = jnp.maximum(
            jnp.dot(w1, x, preferred_element_type=jnp.float32) + b1, 0.0)
        h = jnp.maximum(
            jnp.dot(w2, h, preferred_element_type=jnp.float32) + b2, 0.0)
        h = jnp.maximum(
            jnp.dot(w3, h, preferred_element_type=jnp.float32) + b3, 0.0)
        h = jnp.tanh(
            jnp.dot(w4, h, preferred_element_type=jnp.float32) + b4)
        o_ref[:, pl.ds(off, LANE_CHUNK)] = h.astype(o_ref.dtype)  # [8, C]
        return carry

    lax.fori_loop(0, n_chunks, body, 0)


def pack_params(params):
    """Pack the four (W[out,in], b[out]) pairs into one [4, 16, 128] f32 slab."""
    names = ["fc1", "fc2", "fc3", "fc4"]
    slab = jnp.zeros((4, 16, 128), jnp.float32)
    for l, name in enumerate(names):
        w, b = params[name]
        out_d, in_d = w.shape
        slab = slab.at[l, 0:out_d, 0:in_d].set(w.astype(jnp.float32))
        slab = slab.at[l, 8:8 + out_d, 0].set(b.astype(jnp.float32))
    return slab


def soccer_model_forward(x, params, b_tile=32768):
    """x: [B, 10] float32; params: dict name -> (W[out,in], b[out]).  Returns [B, 2]."""
    B = x.shape[0]

    # Per-call tile sizing: multiple of LANE_CHUNK, no larger than needed.
    b_tile = max(LANE_CHUNK,
                 min(_round_up(b_tile, LANE_CHUNK), _round_up(B, LANE_CHUNK)))
    B_pad = _round_up(B, b_tile)

    # Feature-major, zero-padded input: [16, B_pad] (batch on the lane axis).
    x_fm = jnp.zeros((F_IN_PAD, B_pad), jnp.float32)
    x_fm = x_fm.at[:F_IN, :B].set(x.astype(jnp.float32).T)

    slab = pack_params(params)

    out_fm = pl.pallas_call(
        _soccer_kernel,
        out_shape=jax.ShapeDtypeStruct((F_OUT_PAD, B_pad), jnp.float32),
        grid=(B_pad // b_tile,),
        in_specs=[
            pl.BlockSpec((4, 16, 128), lambda i: (0, 0, 0)),     # params (resident)
            pl.BlockSpec((F_IN_PAD, b_tile), lambda i: (0, i)),  # x tile
        ],
        out_specs=pl.BlockSpec((F_OUT_PAD, b_tile), lambda i: (0, i)),
        compiler_params=pltpu.CompilerParams(
            dimension_semantics=("parallel",)),
    )(slab, x_fm)

    # Back to caller layout [B, 2].
    return out_fm[:F_OUT, :B].T


def init_params(key):
    """PyTorch-style init: W[out,in], b[out], U(-1/sqrt(in), 1/sqrt(in))."""
    dims = [(10, 8), (8, 6), (6, 4), (4, 2)]
    names = ["fc1", "fc2", "fc3", "fc4"]
    params = {}
    for name, (fan_in, fan_out) in zip(names, dims):
        key, kw, kb = jax.random.split(key, 3)
        bound = 1.0 / jnp.sqrt(float(fan_in))
        w = jax.random.uniform(kw, (fan_out, fan_in), jnp.float32, -bound, bound)
        b = jax.random.uniform(kb, (fan_out,), jnp.float32, -bound, bound)
        params[name] = (w, b)
    return params


def reference_forward(x, params):
    h = x
    for name in ["fc1", "fc2", "fc3"]:
        w, b = params[name]
        h = jnp.maximum(h @ w.T + b, 0.0)
    w, b = params["fc4"]
    return jnp.tanh(h @ w.T + b)


if __name__ == "__main__":
    key = jax.random.PRNGKey(0)
    key, kx = jax.random.split(key)

    params = init_params(key)

    # Small batch (as in the original spec's usage).
    B = 8
    x = jax.random.normal(kx, (B, 10), jnp.float32)
    out = jax.block_until_ready(soccer_model_forward(x, params))
    ref = reference_forward(x, params)
    assert out.shape == (B, 2)
    assert jnp.allclose(out, ref, atol=1e-5, rtol=1e-5)

    # Larger, non-tile-multiple batch to exercise tiling + ragged-tail padding.
    key, kx2 = jax.random.split(key)
    B2 = 3000
    x2 = jax.random.normal(kx2, (B2, 10), jnp.float32)
    out2 = jax.block_until_ready(soccer_model_forward(x2, params, b_tile=1024))
    ref2 = reference_forward(x2, params)
    assert out2.shape == (B2, 2)
    assert jnp.allclose(out2, ref2, atol=1e-5, rtol=1e-5)

    print("KERNEL_OK")
</pallas_src>

<mosaic_0001>
module attributes {stable_mosaic.version = 11 : i64} {
  func.func @_soccer_kernel(%arg0: i32, %arg1: memref<4x16x128xf32, #tpu.memory_space<vmem>>, %arg2: memref<16x512xf32, #tpu.memory_space<vmem>>, %arg3: memref<8x512xf32, #tpu.memory_space<vmem>>) attributes {dimension_semantics = [#tpu.dimension_semantics<parallel>], iteration_bounds = array<i64: 1>, scalar_prefetch = 0 : i64, scratch_operands = 0 : i64, tpu.core_type = #tpu.core_type<tc>, window_params = [{pipeline_mode = #tpu.pipeline_mode<synchronous>, transform_indices = @transform_0, window_bounds = array<i64: 4, 16, 128>}, {transform_indices = @transform_1, window_bounds = array<i64: 16, 512>}, {transform_indices = @transform_2, window_bounds = array<i64: 8, 512>}]} {
    %c0 = arith.constant 0 : index
    %c0_0 = arith.constant 0 : index
    %c0_1 = arith.constant 0 : index
    %0 = vector.load %arg1[%c0, %c0_0, %c0_1] : memref<4x16x128xf32, #tpu.memory_space<vmem>>, vector<1x8x16xf32>
    %1 = vector.shape_cast %0 : vector<1x8x16xf32> to vector<8x16xf32>
    %c1 = arith.constant 1 : index
    %c0_2 = arith.constant 0 : index
    %c0_3 = arith.constant 0 : index
    %2 = vector.load %arg1[%c1, %c0_2, %c0_3] : memref<4x16x128xf32, #tpu.memory_space<vmem>>, vector<1x8x8xf32>
    %3 = vector.shape_cast %2 : vector<1x8x8xf32> to vector<8x8xf32>
    %c2 = arith.constant 2 : index
    %c0_4 = arith.constant 0 : index
    %c0_5 = arith.constant 0 : index
    %4 = vector.load %arg1[%c2, %c0_4, %c0_5] : memref<4x16x128xf32, #tpu.memory_space<vmem>>, vector<1x8x8xf32>
    %5 = vector.shape_cast %4 : vector<1x8x8xf32> to vector<8x8xf32>
    %c3 = arith.constant 3 : index
    %c0_6 = arith.constant 0 : index
    %c0_7 = arith.constant 0 : index
    %6 = vector.load %arg1[%c3, %c0_6, %c0_7] : memref<4x16x128xf32, #tpu.memory_space<vmem>>, vector<1x8x8xf32>
    %7 = vector.shape_cast %6 : vector<1x8x8xf32> to vector<8x8xf32>
    %c0_8 = arith.constant 0 : index
    %c8 = arith.constant 8 : index
    %c0_9 = arith.constant 0 : index
    %8 = vector.load %arg1[%c0_8, %c8, %c0_9] : memref<4x16x128xf32, #tpu.memory_space<vmem>>, vector<1x8x1xf32>
    %9 = vector.shape_cast %8 : vector<1x8x1xf32> to vector<8x1xf32>
    %c1_10 = arith.constant 1 : index
    %c8_11 = arith.constant 8 : index
    %c0_12 = arith.constant 0 : index
    %10 = vector.load %arg1[%c1_10, %c8_11, %c0_12] : memref<4x16x128xf32, #tpu.memory_space<vmem>>, vector<1x8x1xf32>
    %11 = vector.shape_cast %10 : vector<1x8x1xf32> to vector<8x1xf32>
    %c2_13 = arith.constant 2 : index
    %c8_14 = arith.constant 8 : index
    %c0_15 = arith.constant 0 : index
    %12 = vector.load %arg1[%c2_13, %c8_14, %c0_15] : memref<4x16x128xf32, #tpu.memory_space<vmem>>, vector<1x8x1xf32>
    %13 = vector.shape_cast %12 : vector<1x8x1xf32> to vector<8x1xf32>
    %c3_16 = arith.constant 3 : index
    %c8_17 = arith.constant 8 : index
    %c0_18 = arith.constant 0 : index
    %14 = vector.load %arg1[%c3_16, %c8_17, %c0_18] : memref<4x16x128xf32, #tpu.memory_space<vmem>>, vector<1x8x1xf32>
    %15 = vector.shape_cast %14 : vector<1x8x1xf32> to vector<8x1xf32>
    %c0_i32 = arith.constant 0 : i32
    %c512_i32 = arith.constant 512 : i32
    %16 = arith.muli %c0_i32, %c512_i32 : i32
    %17 = tpu.assume_multiple %16, 512 : i32
    %c0_19 = arith.constant 0 : index
    %18 = arith.index_cast %17 : i32 to index
    %19 = vector.load %arg2[%c0_19, %18] : memref<16x512xf32, #tpu.memory_space<vmem>>, vector<16x512xf32>
    %cst = arith.constant dense<0.000000e+00> : vector<8x512xf32>
    %20 = tpu.matmul %1, %19, %cst {dimension_numbers = #tpu.dot_dimension_numbers<[1], [0], [0], [1], [0, 0, 1, 1], [], []>} : vector<8x16xf32>, vector<16x512xf32>, vector<8x512xf32> -> vector<8x512xf32>
    %21 = vector.broadcast %9 : vector<8x1xf32> to vector<8x512xf32>
    %22 = arith.addf %20, %21 : vector<8x512xf32>
    %cst_20 = arith.constant 0.000000e+00 : f32
    %23 = vector.broadcast %cst_20 : f32 to vector<8x512xf32>
    %24 = arith.maximumf %22, %23 : vector<8x512xf32>
    %cst_21 = arith.constant dense<0.000000e+00> : vector<8x512xf32>
    %25 = tpu.matmul %3, %24, %cst_21 {dimension_numbers = #tpu.dot_dimension_numbers<[1], [0], [0], [1], [0, 0, 1, 1], [], []>} : vector<8x8xf32>, vector<8x512xf32>, vector<8x512xf32> -> vector<8x512xf32>
    %26 = vector.broadcast %11 : vector<8x1xf32> to vector<8x512xf32>
    %27 = arith.addf %25, %26 : vector<8x512xf32>
    %cst_22 = arith.constant 0.000000e+00 : f32
    %28 = vector.broadcast %cst_22 : f32 to vector<8x512xf32>
    %29 = arith.maximumf %27, %28 : vector<8x512xf32>
    %cst_23 = arith.constant dense<0.000000e+00> : vector<8x512xf32>
    %30 = tpu.matmul %5, %29, %cst_23 {dimension_numbers = #tpu.dot_dimension_numbers<[1], [0], [0], [1], [0, 0, 1, 1], [], []>} : vector<8x8xf32>, vector<8x512xf32>, vector<8x512xf32> -> vector<8x512xf32>
    %31 = vector.broadcast %13 : vector<8x1xf32> to vector<8x512xf32>
    %32 = arith.addf %30, %31 : vector<8x512xf32>
    %cst_24 = arith.constant 0.000000e+00 : f32
    %33 = vector.broadcast %cst_24 : f32 to vector<8x512xf32>
    %34 = arith.maximumf %32, %33 : vector<8x512xf32>
    %cst_25 = arith.constant dense<0.000000e+00> : vector<8x512xf32>
    %35 = tpu.matmul %7, %34, %cst_25 {dimension_numbers = #tpu.dot_dimension_numbers<[1], [0], [0], [1], [0, 0, 1, 1], [], []>} : vector<8x8xf32>, vector<8x512xf32>, vector<8x512xf32> -> vector<8x512xf32>
    %36 = vector.broadcast %15 : vector<8x1xf32> to vector<8x512xf32>
    %37 = arith.addf %35, %36 : vector<8x512xf32>
    %38 = math.tanh %37 : vector<8x512xf32>
    %c0_26 = arith.constant 0 : index
    %39 = arith.index_cast %17 : i32 to index
    %40 = vector.load %arg3[%c0_26, %39] : memref<8x512xf32, #tpu.memory_space<vmem>>, vector<8x512xf32>
    tpu.vector_store %arg3[%c0_26, %39], %38 {strides = array<i32>} : memref<8x512xf32, #tpu.memory_space<vmem>>, vector<8x512xf32>,
    %c1_i32 = arith.constant 1 : i32
    return
  }
  func.func @transform_0(%arg0: i32) -> (i32, i32, i32) {
    %c0_i32 = arith.constant 0 : i32
    %c0_i32_0 = arith.constant 0 : i32
    %c0_i32_1 = arith.constant 0 : i32
    %c0_i32_2 = arith.constant 0 : i32
    return %c0_i32, %c0_i32_0, %c0_i32_1 : i32, i32, i32
  }
  func.func @transform_1(%arg0: i32) -> (i32, i32) {
    %c0_i32 = arith.constant 0 : i32
    %c0_i32_0 = arith.constant 0 : i32
    return %c0_i32, %arg0 : i32, i32
  }
  func.func @transform_2(%arg0: i32) -> (i32, i32) {
    %c0_i32 = arith.constant 0 : i32
    %c0_i32_0 = arith.constant 0 : i32
    return %c0_i32, %arg0 : i32, i32
  }
}

</mosaic_0001>

<bundles_post_ra>
// kernel: tpu_custom_call.1
= control target key start
LH: loop header
LB: loop body
LE: loop exit
PB: predicated region body
PF: predicated region fallthrough
CT: control target
= control target key end

     0   :  { %7 = vsyncpa [#allocation3], 0  ;;  %s878_s0 = inlined_call_operand.hbm [shape: f32[4,16,128], index: 0, kind: input, shape index: {}]   ;;  %s879_s1 = inlined_call_operand.hbm [shape: f32[16,512], index: 1, kind: input, shape index: {}]   ;;  %s880_s2 = inlined_call_operand.hbm [shape: f32[8,512], index: 2, kind: output, shape index: {}]  }
   0x1   :  { %8 = vsyncpa [#allocation6], 0 }
   0x2   :  { %9 = vsyncpa [#allocation4], 0  ;;  %s804_s9 = smov [#allocation2]   ;;  %s732_s13 = scalar_lea.hbm %s878_s0, 1024 }
   0x3   :  { %s15_s10 = sshll.u32 %s804_s9, 4  ;;  %p733_p0 = scmp.ne.s32.totalorder %s878_s0, %s732_s13  ;;  %s16_s10 = int_to_ptr.vmem [resolvable:$true] %s15_s10 }
   0x4   :  { %p736_p1 = scmp.lt.u32.totalorder %s732_s13, %s878_s0 }
   0x6   :  { %p738_p2 = pnand %p736_p1, %p733_p0 }
   0x8   :  { %741 = shalt.err (!%p738_p2)
}
   0x9   :  { %s742_s18 = scalar_lea.vmem %s16_s10, 1024  ;;  %p747_p4 = scmp.lt.s32.totalorder %s16_s10, %s16_s10 }
   0xa   :  { %p743_p3 = scmp.ne.s32.totalorder %s16_s10, %s742_s18  ;;  %p748_p5 = scmp.lt.s32.totalorder %s742_s18, %s742_s18 }
   0xc   :  { %p749_p6 = por %p748_p5, %p747_p4 }
   0xe   :  { %p750_p7 = pnand %p749_p6, %p743_p3 }
  0x10   :  { %753 = shalt.err (!%p750_p7)
}
  0x11   :  { %s805_s19 = smov 128   ;;  %s806_s20 = smov 8  }
  0x12   :  { %21 = dma.hbm_to_vmem [thread:$0]  %s878_s0, 1024, %s16_s10, [#allocation3], %s805_s19, %s805_s19, %s806_s20  }
  0x13   :  { %s807_s23 = smov [#allocation5]   ;;  %s754_s27 = scalar_lea.hbm %s879_s1, 1024 }
  0x14   :  { %s27_s24 = sshll.u32 %s807_s23, 4  ;;  %p755_p8 = scmp.ne.s32.totalorder %s879_s1, %s754_s27  ;;  %s28_s24 = int_to_ptr.vmem [resolvable:$true] %s27_s24 }
  0x15   :  { %p758_p9 = scmp.lt.u32.totalorder %s754_s27, %s879_s1 }
  0x17   :  { %p760_p10 = pnand %p758_p9, %p755_p8 }
  0x19   :  { %763 = shalt.err (!%p760_p10)
}
  0x1a   :  { %s764_s4 = scalar_lea.vmem %s28_s24, 1024  ;;  %p769_p12 = scmp.lt.s32.totalorder %s28_s24, %s28_s24 }
  0x1b   :  { %p765_p11 = scmp.ne.s32.totalorder %s28_s24, %s764_s4  ;;  %p770_p13 = scmp.lt.s32.totalorder %s764_s4, %s764_s4 }
  0x1d   :  { %p771_p0 = por %p770_p13, %p769_p12 }
  0x1f   :  { %p772_p1 = pnand %p771_p0, %p765_p11 }
  0x21   :  { %775 = shalt.err (!%p772_p1)
}
  0x22   :  { %s808_s0 = smov 512   ;;  %s809_s5 = smov 32  }
  0x23   :  { %33 = dma.hbm_to_vmem [thread:$0]  %s879_s1, 1024, %s28_s24, [#allocation6], %s808_s0, %s808_s0, %s809_s5  }
  0x24   :  { %798 = dma.done.wait [#allocation3], 1024  }
  0x25   :  { %799 = vsyncadd [#allocation3], 4294966272 }
  0x26   :  { %800 = dma.done.wait [#allocation6], 1024  }
  0x27   :  { %801 = vsyncadd [#allocation6], 4294966272  ;;  %v810_v0 = vmov 0.0   ;;  %v811_v1 = vmov 0   ;;  %v52_v2 = vld [vmem:[#allocation5 + $0x8] sm:$0xff]  ;;  %v54_v4 = vld [vmem:[#allocation5 + $0x18] sm:$0xff] }
  0x28   :  { %132 = vmatprep.mubr.f32.mxu0 %v810_v0  ;;  %203 = vmatprep.mubr.f32.mxu1 %v810_v0  ;;  %v56_v3 = vld [vmem:[#allocation5 + $0x28] sm:$0xff]  ;;  %v58_v6 = vld [vmem:[#allocation5 + $0x38] sm:$0xff]  ;;  %v51_v7 = vld [vmem:[#allocation5] sm:$0xff]  ;;  %vm64_vm0 = vcmask 130048   ;;  %vm219_vm1 = vcmask 64512   ;;  %s812_s1 = smov [#allocation7]  }
  0x29   :  { %722 = vset.pattern.permute.xlu0 %v811_v1  ;;  %723 = vset.pattern.permute.xlu1 %v811_v1  ;;  %v705_v5 = vpack.c.bf16 %v56_v3, %v52_v2  ;;  %v55_v8 = vld [vmem:[#allocation5 + $0x20] sm:$0xff]  ;;  %v709_v9 = vpack.c.bf16 %v58_v6, %v54_v4  ;;  %v53_v11 = vld [vmem:[#allocation5 + $0x10] sm:$0xff]  ;;  %v47_v14 = vld [vmem:[#allocation2 + $0x8] sm:$0xff]  ;;  %s687_s8 = sshll.u32 %s812_s1, 4  ;;  %s688_s8 = int_to_ptr.vmem [resolvable:$true] %s687_s8 }
  0x2a   :  { %v707_v10 = vpack.c.bf16 %v55_v8, %v51_v7  ;;  %v57_v12 = vld [vmem:[#allocation5 + $0x30] sm:$0xff]  ;;  %v40_v15 = vld [vmem:[#allocation2] sm:$0xff]  ;;  %61 = vperm.xlu0 %722, %v47_v14   ;;  %v48_v16 = vld [vmem:[#allocation2 + $0x18] sm:$0xff]  ;;  %s776_s9 = scalar_lea.vmem %s688_s8, 512  ;;  %p781_p3 = scmp.lt.s32.totalorder %s688_s8, %s688_s8 }
  0x2b   :  { %706 = vmatprep.subr.bf16.mxu0 %v705_v5  ;;  %v711_v13 = vpack.c.bf16 %v57_v12, %v53_v11  ;;  %710 = vmatprep.subr.bf16.mxu1 %v709_v9  ;;  %v42_v29 = vld [vmem:[#allocation2 + $0x10] sm:$0xff]  ;;  %v49_v31 = vld [vmem:[#allocation2 + $0x28] sm:$0xff]  ;;  %v50_v32 = vld [vmem:[#allocation2 + $0x38] sm:$0xff]  ;;  %p777_p2 = scmp.ne.s32.totalorder %s688_s8, %s776_s9  ;;  %p782_p4 = scmp.lt.s32.totalorder %s776_s9, %s776_s9 }
  0x2c   :  { %708 = vmatpush1.bf16.msra.mxu0 %v707_v10  ;;  %371 = vperm.xlu1 %723, %v49_v31   ;;  %v44_v45 = vld [vmem:[#allocation2 + $0x20] sm:$0xff]  ;;  %v46_v59 = vld [vmem:[#allocation2 + $0x30] sm:$0xff] }
  0x2d   :  { %712 = vmatpush1.bf16.msra.mxu1 %v711_v13  ;;  %p783_p5 = por %p782_p4, %p781_p3 }
  0x2e   :  { %216 = vperm.xlu0 %722, %v48_v16  }
  0x2f   :  { %697 = vmatmul.mubr.msk.f32.vlgmr.msra.gmra.mrb[0].mxu0 %vm64_vm0, %v40_v15  ;;  %p784_p6 = pnand %p783_p5, %p777_p2 }
  0x30   :  { %698 = vmatmul.mubr.msk.f32.vlgmr.msra.gmra.mrb[0].mxu1 %vm64_vm0, %v40_v15  ;;  %287 = vmatprep.mubr.f32.mxu0 %v810_v0 }
  0x31   :  { %358 = vmatprep.mubr.f32.mxu1 %v810_v0  ;;  %525 = vperm.xlu1 %723, %v50_v32  }
  0xa9   :  { %v62_v17 = vpop.permute.xlu0 %61 }
  0xab   :  { %v372_v47 = vpop.permute.xlu1 %371 }
  0xad   :  { %v217_v33 = vpop.permute.xlu0 %216 }
  0xb0   :  { %v526_v61 = vpop.permute.xlu1 %525 }
 0x102   :  { %v134_v18 = vpop.f32.mrb[0].mxu0 }
 0x103   :  { %v135_v19 = vadd.f32 %v134_v18, %v62_v17  ;;  %v205_v20 = vpop.f32.mrb[0].mxu1  ;;  %v136_v21 = vpop.f32.mrb[1].mxu0 }
 0x104   :  { %v206_v22 = vadd.f32 %v205_v20, %v62_v17  ;;  %v137_v23 = vadd.f32 %v136_v21, %v62_v17  ;;  %v207_v24 = vpop.f32.mrb[1].mxu1 }
 0x105   :  { %v208_v25 = vadd.f32 %v207_v24, %v62_v17  ;;  %v210_v27 = vmax.f32 %v135_v19, 0.0 }
 0x106   :  { %v211_v26 = vmax.f32 %v137_v23, 0.0  ;;  %v212_v30 = vmax.f32 %v206_v22, 0.0 }
 0x107   :  { %v213_v28 = vmax.f32 %v208_v25, 0.0 }
 0x108   :  { %223 = vmatprep.subr.mxu0 %v211_v26 }
 0x109   :  { %294 = vmatprep.subr.mxu1 %v213_v28  ;;  %224 = vmatpush1.msra.mxu0 %v210_v27 }
 0x10a   :  { %295 = vmatpush1.msra.mxu1 %v212_v30  ;;  %699 = vmatmul.mubr.msk.f32.vlgmr.msra.gmra.mrb[2].mxu0 %vm219_vm1, %v42_v29 }
 0x10b   :  { %700 = vmatmul.mubr.msk.f32.vlgmr.msra.gmra.mrb[2].mxu1 %vm219_vm1, %v42_v29  ;;  %441 = vmatprep.mubr.f32.mxu0 %v810_v0 }
 0x10c   :  { %512 = vmatprep.mubr.f32.mxu1 %v810_v0 }
 0x1dd   :  { %v289_v34 = vpop.f32.mrb[2].mxu0 }
 0x1de   :  { %v290_v35 = vadd.f32 %v289_v34, %v217_v33  ;;  %v360_v36 = vpop.f32.mrb[2].mxu1  ;;  %v291_v37 = vpop.f32.mrb[3].mxu0 }
 0x1df   :  { %v361_v38 = vadd.f32 %v360_v36, %v217_v33  ;;  %v292_v39 = vadd.f32 %v291_v37, %v217_v33  ;;  %v362_v40 = vpop.f32.mrb[3].mxu1 }
 0x1e0   :  { %v363_v41 = vadd.f32 %v362_v40, %v217_v33  ;;  %v365_v43 = vmax.f32 %v290_v35, 0.0 }
 0x1e1   :  { %v366_v42 = vmax.f32 %v292_v39, 0.0  ;;  %v367_v46 = vmax.f32 %v361_v38, 0.0 }
 0x1e2   :  { %v368_v44 = vmax.f32 %v363_v41, 0.0 }
 0x1e3   :  { %377 = vmatprep.subr.mxu0 %v366_v42 }
 0x1e4   :  { %448 = vmatprep.subr.mxu1 %v368_v44  ;;  %378 = vmatpush1.msra.mxu0 %v365_v43 }
 0x1e5   :  { %449 = vmatpush1.msra.mxu1 %v367_v46  ;;  %701 = vmatmul.mubr.msk.f32.vlgmr.msra.gmra.mrb[4].mxu0 %vm219_vm1, %v44_v45 }
 0x1e6   :  { %702 = vmatmul.mubr.msk.f32.vlgmr.msra.gmra.mrb[4].mxu1 %vm219_vm1, %v44_v45  ;;  %595 = vmatprep.mubr.f32.mxu0 %v810_v0 }
 0x1e7   :  { %666 = vmatprep.mubr.f32.mxu1 %v810_v0 }
 0x2b8   :  { %v443_v48 = vpop.f32.mrb[4].mxu0 }
 0x2b9   :  { %v444_v49 = vadd.f32 %v443_v48, %v372_v47  ;;  %v514_v50 = vpop.f32.mrb[4].mxu1  ;;  %v445_v51 = vpop.f32.mrb[5].mxu0 }
 0x2ba   :  { %v515_v52 = vadd.f32 %v514_v50, %v372_v47  ;;  %v446_v53 = vadd.f32 %v445_v51, %v372_v47  ;;  %v516_v54 = vpop.f32.mrb[5].mxu1 }
 0x2bb   :  { %v517_v55 = vadd.f32 %v516_v54, %v372_v47  ;;  %v519_v57 = vmax.f32 %v444_v49, 0.0 }
 0x2bc   :  { %v520_v56 = vmax.f32 %v446_v53, 0.0  ;;  %v521_v60 = vmax.f32 %v515_v52, 0.0 }
 0x2bd   :  { %v522_v58 = vmax.f32 %v517_v55, 0.0 }
 0x2be   :  { %531 = vmatprep.subr.mxu0 %v520_v56 }
 0x2bf   :  { %602 = vmatprep.subr.mxu1 %v522_v58  ;;  %532 = vmatpush1.msra.mxu0 %v519_v57 }
 0x2c0   :  { %603 = vmatpush1.msra.mxu1 %v521_v60  ;;  %703 = vmatmul.mubr.msk.f32.vlgmr.msra.gmra.mrb[6].mxu0 %vm219_vm1, %v46_v59 }
 0x2c1   :  { %704 = vmatmul.mubr.msk.f32.vlgmr.msra.gmra.mrb[6].mxu1 %vm219_vm1, %v46_v59 }
 0x393   :  { %v597_v62 = vpop.f32.mrb[6].mxu0 }
 0x394   :  { %v598_v63 = vadd.f32 %v597_v62, %v526_v61  ;;  %v668_v0 = vpop.f32.mrb[6].mxu1  ;;  %v599_v1 = vpop.f32.mrb[7].mxu0 }
 0x395   :  { %v669_v2 = vadd.f32 %v668_v0, %v526_v61  ;;  %v600_v3 = vadd.f32 %v599_v1, %v526_v61  ;;  %v670_v4 = vpop.f32.mrb[7].mxu1 }
 0x396   :  { %724 = vtanh.f32 %v598_v63  ;;  %v671_v5 = vadd.f32 %v670_v4, %v526_v61 }
 0x397   :  { %726 = vtanh.f32 %v669_v2 }
 0x398   :  { %728 = vtanh.f32 %v600_v3 }
 0x399   :  { %730 = vtanh.f32 %v671_v5 }
 0x3a0   :  { %v725_v6 = vpop.eup %724 }
 0x3a1   :  { %v727_v7 = vpop.eup %726  ;;  %677 = vst [vmem:[#allocation7] sm:$0xff] %v725_v6 }
 0x3a2   :  { %v729_v8 = vpop.eup %728  ;;  %679 = vst [vmem:[#allocation7 + $0x10] sm:$0xff] %v727_v7 }
 0x3a3   :  { %v731_v9 = vpop.eup %730  ;;  %678 = vst [vmem:[#allocation7 + $0x8] sm:$0xff] %v729_v8 }
 0x3a4   :  { %680 = vst [vmem:[#allocation7 + $0x18] sm:$0xff] %v731_v9 }
 0x3a5   :  { %787 = shalt.err (!%p784_p6)
}
 0x3a6   :  { %s788_s12 = scalar_lea.hbm %s880_s2, 512 }
 0x3a7   :  { %p789_p7 = scmp.ne.s32.totalorder %s880_s2, %s788_s12  ;;  %p792_p8 = scmp.lt.u32.totalorder %s788_s12, %s880_s2 }
 0x3a9   :  { %p794_p9 = pnand %p792_p8, %p789_p7 }
 0x3ab   :  { %797 = shalt.err (!%p794_p9)
}
 0x3ac   :  { %690 = dma.vmem_to_hbm [thread:$0]  %s688_s8, 512, %s880_s2, [#allocation4]  }
 0x3ad   :  { %802 = dma.done.wait [#allocation4], 512  }
 0x3ae   :  { %803 = vsyncadd [#allocation4], 4294966784 }
 0x3af   :  { %694 = vsyncpa [#allocation3], 1 }
 0x3b0   :  { %695 = vsyncpa [#allocation6], 1 }
 0x3b1   :  { %696 = vsyncpa [#allocation4], 1 }

</bundles_post_ra>
